<compile_context>
chip_gen: v7x
topology: tpu7x:2x2x1
jax: 0.10.0
libtpu: 0.0.40
codegen_flags: <defaults>
</compile_context>

<pallas_src>
import jax
import jax.numpy as jnp
from jax.experimental import pallas as pl
from jax.experimental.pallas import tpu as pltpu


def mlp_kernel(x_ref, w1_ref, b1_ref, w2_ref, b2_ref, o_ref):
    # x_ref:  (1, Np)  -- batch on the lane axis (Np = batch padded to 128)
    # w1_ref: (H, 1), b1_ref: (H, 1), w2_ref: (H, 1), b2_ref: (1, 1)
    # o_ref:  (1, Np)  -- lane-dense output slab
    x = x_ref[...]                                            # (1, Np)
    # Layer 1: n_feature == 1  =>  x @ W1 is just an outer product. Do it on the VPU.
    h = jnp.maximum(w1_ref[...] * x + b1_ref[...], 0.0)       # (H, Np)
    # Layer 2: n_output == 1  =>  h @ W2 is a dot over H. VPU mul + sublane reduce (XLU).
    y = jnp.sum(h * w2_ref[...], axis=0, keepdims=True)       # (1, Np)
    o_ref[...] = y + b2_ref[...]


def net_forward(x, w1, b1, w2, b2):
    """x: (N, 1) f32; w1: (1, H); b1: (H,); w2: (H, 1); b2: (1,) -> (N, 1) f32."""
    n, f = x.shape
    h_dim = w1.shape[1]
    o_dim = w2.shape[1]
    assert f == 1 and o_dim == 1, "kernel specialized to n_feature=1, n_output=1"

    # Pad the batch to a multiple of 128: it becomes the lane axis inside the kernel,
    # so all loads/stores are full-vreg and the output store is unmasked.
    lane = 128
    n_pad = ((n + lane - 1) // lane) * lane

    x_row = jnp.zeros((1, n_pad), jnp.float32).at[:, :n].set(x.reshape(1, n))
    w1_col = w1.reshape(h_dim, 1).astype(jnp.float32)   # (H, 1)
    b1_col = b1.reshape(h_dim, 1).astype(jnp.float32)   # (H, 1)
    w2_col = w2.reshape(h_dim, 1).astype(jnp.float32)   # (H, 1)
    b2_2d = b2.reshape(1, 1).astype(jnp.float32)        # (1, 1)

    vmem_spec = pl.BlockSpec(memory_space=pltpu.MemorySpace.VMEM)

    y_row = pl.pallas_call(
        mlp_kernel,
        out_shape=jax.ShapeDtypeStruct((1, n_pad), jnp.float32),
        in_specs=[vmem_spec] * 5,
        out_specs=vmem_spec,
    )(x_row, w1_col, b1_col, w2_col, b2_2d)

    # Undo the transpose/padding done for lane-density.
    return y_row[0, :n].reshape(n, 1)


def init_params(key, n_feature, n_hidden, n_output):
    """Deterministic init mimicking torch.nn.Linear default (uniform +-1/sqrt(fan_in))."""
    k1, k2, k3, k4 = jax.random.split(key, 4)
    bound1 = 1.0 / jnp.sqrt(jnp.float32(n_feature))
    bound2 = 1.0 / jnp.sqrt(jnp.float32(n_hidden))
    # Stored as (in, out): transpose of PyTorch's (out, in) layout.
    w1 = jax.random.uniform(k1, (n_feature, n_hidden), jnp.float32, -bound1, bound1)
    b1 = jax.random.uniform(k2, (n_hidden,), jnp.float32, -bound1, bound1)
    w2 = jax.random.uniform(k3, (n_hidden, n_output), jnp.float32, -bound2, bound2)
    b2 = jax.random.uniform(k4, (n_output,), jnp.float32, -bound2, bound2)
    return w1, b1, w2, b2


if __name__ == "__main__":
    # Matches the regression script: x = unsqueeze(linspace(-1, 1, 100), dim=1)
    # Net(n_feature=1, n_hidden=10, n_output=1)
    n_points, n_feature, n_hidden, n_output = 100, 1, 10, 1

    key = jax.random.PRNGKey(0)
    w1, b1, w2, b2 = init_params(key, n_feature, n_hidden, n_output)

    x = jnp.linspace(-1.0, 1.0, n_points, dtype=jnp.float32).reshape(n_points, 1)

    y = net_forward(x, w1, b1, w2, b2)
    y = jax.block_until_ready(y)

    # Reference check in plain JAX (same math) to make sure the kernel is correct.
    y_ref = jnp.maximum(x @ w1 + b1, 0.0) @ w2 + b2
    assert y.shape == (n_points, n_output)
    assert jnp.allclose(y, y_ref, atol=1e-5, rtol=1e-5)

    print("KERNEL_OK")
</pallas_src>

<mosaic_0001>
module attributes {stable_mosaic.version = 11 : i64} {
  func.func @mlp_kernel(%arg0: memref<1x128xf32, #tpu.memory_space<vmem>>, %arg1: memref<10x1xf32, #tpu.memory_space<vmem>>, %arg2: memref<10x1xf32, #tpu.memory_space<vmem>>, %arg3: memref<10x1xf32, #tpu.memory_space<vmem>>, %arg4: memref<1x1xf32, #tpu.memory_space<vmem>>, %arg5: memref<1x128xf32, #tpu.memory_space<vmem>>) attributes {dimension_semantics = [], scalar_prefetch = 0 : i64, scratch_operands = 0 : i64, tpu.core_type = #tpu.core_type<tc>} {
    %c0 = arith.constant 0 : index
    %c0_0 = arith.constant 0 : index
    %0 = vector.load %arg0[%c0, %c0_0] : memref<1x128xf32, #tpu.memory_space<vmem>>, vector<1x128xf32>
    %c0_1 = arith.constant 0 : index
    %c0_2 = arith.constant 0 : index
    %1 = vector.load %arg1[%c0_1, %c0_2] : memref<10x1xf32, #tpu.memory_space<vmem>>, vector<10x1xf32>
    %2 = vector.broadcast %1 : vector<10x1xf32> to vector<10x128xf32>
    %3 = vector.broadcast %0 : vector<1x128xf32> to vector<10x128xf32>
    %4 = arith.mulf %2, %3 : vector<10x128xf32>
    %c0_3 = arith.constant 0 : index
    %c0_4 = arith.constant 0 : index
    %5 = vector.load %arg2[%c0_3, %c0_4] : memref<10x1xf32, #tpu.memory_space<vmem>>, vector<10x1xf32>
    %6 = vector.broadcast %5 : vector<10x1xf32> to vector<10x128xf32>
    %7 = arith.addf %4, %6 : vector<10x128xf32>
    %cst = arith.constant 0.000000e+00 : f32
    %8 = vector.broadcast %cst : f32 to vector<10x128xf32>
    %9 = arith.maximumf %7, %8 : vector<10x128xf32>
    %c0_5 = arith.constant 0 : index
    %c0_6 = arith.constant 0 : index
    %10 = vector.load %arg3[%c0_5, %c0_6] : memref<10x1xf32, #tpu.memory_space<vmem>>, vector<10x1xf32>
    %11 = vector.broadcast %10 : vector<10x1xf32> to vector<10x128xf32>
    %12 = arith.mulf %9, %11 : vector<10x128xf32>
    %cst_7 = arith.constant dense<0.000000e+00> : vector<128xf32>
    %13 = vector.multi_reduction <add>, %12, %cst_7 [0] : vector<10x128xf32> to vector<128xf32>
    %14 = vector.shape_cast %13 : vector<128xf32> to vector<1x128xf32>
    %c0_8 = arith.constant 0 : index
    %c0_9 = arith.constant 0 : index
    %15 = vector.load %arg4[%c0_8, %c0_9] : memref<1x1xf32, #tpu.memory_space<vmem>>, vector<1x1xf32>
    %16 = vector.broadcast %15 : vector<1x1xf32> to vector<1x128xf32>
    %17 = arith.addf %14, %16 : vector<1x128xf32>
    %c0_10 = arith.constant 0 : index
    %c0_11 = arith.constant 0 : index
    %18 = vector.load %arg5[%c0_10, %c0_11] : memref<1x128xf32, #tpu.memory_space<vmem>>, vector<1x128xf32>
    tpu.vector_store %arg5[%c0_10, %c0_11], %17 {strides = array<i32>} : memref<1x128xf32, #tpu.memory_space<vmem>>, vector<1x128xf32>,
    return
  }
}

</mosaic_0001>

<bundles_post_ra>
// kernel: tpu_custom_call.1
= control target key start
LH: loop header
LB: loop body
LE: loop exit
PB: predicated region body
PF: predicated region fallthrough
CT: control target
= control target key end

     0   :  { %s206_s0 = inlined_call_operand.vmem [shape: f32[1,128], index: 0, kind: input, shape index: {}]   ;;  %s207_s1 = inlined_call_operand.vmem [shape: f32[10,1], index: 1, kind: input, shape index: {}]   ;;  %s208_s2 = inlined_call_operand.vmem [shape: f32[10,1], index: 2, kind: input, shape index: {}]   ;;  %s209_s3 = inlined_call_operand.vmem [shape: f32[10,1], index: 3, kind: input, shape index: {}]   ;;  %s210_s4 = inlined_call_operand.<no memory space> [shape: f32[1,1], index: 4, kind: input, shape index: {}]   ;;  %s211_s5 = inlined_call_operand.hbm [shape: f32[1,128], index: 5, kind: output, shape index: {}]  }
   0x1   :  { %v10_v0 = vstv %s210_s4 }
   0x2   :  { %11 = vst [vmem:[#allocation2] sm:$0x1] %v10_v0 }
   0x3   :  { %v45_v1 = vld [vmem:[%s208_s2 + $0x8] sm:$0x3]  ;;  %v138_v3 = vmov 0  }
   0x4   :  { %v25_v2 = vld [vmem:[%s207_s1 + $0x8] sm:$0x3]  ;;  %113 = vset.pattern.permute.xlu1 %v138_v3  ;;  %112 = vset.pattern.permute.xlu0 %v138_v3 }
   0x5   :  { %53 = vperm.xlu1 %113, %v45_v1   ;;  %33 = vperm.xlu0 %112, %v25_v2  }
   0x6   :  { %12 = vsyncpa [#allocation4], 0  ;;  %v44_v4 = vld [vmem:[%s208_s2] sm:$0xff]  ;;  %v61_v7 = vld [vmem:[%s209_s3 + $0x8] sm:$0x3]  ;;  %vm74_vm0 = vcmask 1041408   ;;  %v89_v26 = vlaneseq }
   0x7   :  { %v24_v5 = vld [vmem:[%s207_s1] sm:$0xff] }
   0x8   :  { %v60_v6 = vld [vmem:[%s209_s3] sm:$0xff]  ;;  %v90_v29 = vshrl.u32 %v89_v26, 7 }
   0x9   :  { %48 = vperm.xlu1 %113, %v44_v4   ;;  %28 = vperm.xlu0 %112, %v24_v5   ;;  %v83_v8 = vld [vmem:[#allocation2] sm:$0x1] }
   0xa   :  { %v109_v9 = vld [vmem:[%s206_s0] ss:$0 sm:$0xff]  ;;  %v91_v31 = vsub.s32 0, %v90_v29  ;;  %s139_s0 = smov [#allocation3]  }
   0xb   :  { %s101_s1 = sshll.u32 %s139_s0, 4  ;;  %s102_s1 = int_to_ptr.vmem [resolvable:$true] %s101_s1 }
   0xc   :  { %s114_s3 = scalar_lea.vmem %s102_s1, 16  ;;  %s118_s7 = scalar_lea.vmem %s102_s1, 32 }
   0xd   :  { %64 = vperm.xlu1 %113, %v60_v6   ;;  %69 = vperm.xlu0 %112, %v61_v7   ;;  %p115_p0 = scmp.ne.s32.totalorder %s102_s1, %s114_s3  ;;  %p119_p1 = scmp.lt.s32.totalorder %s102_s1, %s102_s1 }
   0xe   :  { %p120_p2 = scmp.lt.s32.totalorder %s118_s7, %s114_s3 }
  0x10   :  { %p121_p3 = por %p120_p2, %p119_p1 }
  0x11   :  { %86 = vperm.xlu0 %112, %v83_v8  }
  0x12   :  { %p122_p4 = pnand %p121_p3, %p115_p0 }
  0x84   :  { %v54_v10 = vpop.permute.xlu1 %53  ;;  %v34_v11 = vpop.permute.xlu0 %33 }
  0x85   :  { %v43_v12 = vmul.f32 %v109_v9, %v34_v11 }
  0x87   :  { %v57_v13 = vadd.f32 %v54_v10, %v43_v12 }
  0x88   :  { %v49_v14 = vpop.permute.xlu1 %48  ;;  %v29_v15 = vpop.permute.xlu0 %28 }
  0x89   :  { %v42_v16 = vmul.f32 %v109_v9, %v29_v15  ;;  %v59_v18 = vmax.f32 %v57_v13, 0.0 }
  0x8b   :  { %v56_v17 = vadd.f32 %v49_v14, %v42_v16 }
  0x8c   :  { %v70_v19 = vpop.permute.xlu0 %69  ;;  %v65_v22 = vpop.permute.xlu1 %64 }
  0x8d   :  { %v58_v20 = vmax.f32 %v56_v17, 0.0  ;;  %v73_v21 = vmul.f32 %v70_v19, %v59_v18 }
  0x8f   :  { %v72_v23 = vmul.f32 %v65_v22, %v58_v20  ;;  %v75_v24 = vsel %vm74_vm0, %v73_v21, 0.0 }
  0x90   :  { %v87_v33 = vpop.permute.xlu0 %86 }
  0x91   :  { %v76_v25 = vadd.f32 %v75_v24, %v72_v23  ;;  %v92_v35 = vrot.slane %v87_v33, %v91_v31 }
  0x93   :  { %v77_v27 = vrot.slane %v76_v25, 4 }
  0x95   :  { %v78_v28 = vadd.f32 %v77_v27, %v76_v25 }
  0x97   :  { %v79_v30 = vrot.slane %v78_v28, 2 }
  0x99   :  { %v80_v32 = vadd.f32 %v79_v30, %v78_v28 }
  0x9b   :  { %v81_v34 = vrot.slane %v80_v32, 1 }
  0x9d   :  { %v82_v36 = vadd.f32 %v81_v34, %v80_v32 }
  0x9f   :  { %v93_v37 = vadd.f32 %v92_v35, %v82_v36 }
  0xa1   :  { %94 = vst [vmem:[#allocation3] sm:$0x1] %v93_v37 }
  0xa2   :  { %125 = shalt.err (!%p122_p4)
}
  0xa3   :  { %s126_s10 = scalar_lea.hbm %s211_s5, 16 }
  0xa4   :  { %p127_p5 = scmp.ne.s32.totalorder %s211_s5, %s126_s10  ;;  %p130_p6 = scmp.lt.u32.totalorder %s126_s10, %s211_s5 }
  0xa6   :  { %p132_p7 = pnand %p130_p6, %p127_p5 }
  0xa8   :  { %135 = shalt.err (!%p132_p7)
}
  0xa9   :  { %104 = dma.vmem_to_hbm [thread:$0]  %s102_s1, 16, %s211_s5, [#allocation4]  }
  0xaa   :  { %136 = dma.done.wait [#allocation4], 16  }
  0xab   :  { %137 = vsyncadd [#allocation4], 4294967280 }
  0xac   :  { %108 = vsyncpa [#allocation4], 1 }

</bundles_post_ra>
